<compile_context>
chip_gen: v7x
topology: tpu7x:2x2x1
jax: 0.10.0
libtpu: 0.0.40
codegen_flags: <defaults>
</compile_context>

<pallas_src>
import functools

import jax
import jax.numpy as jnp
from jax import lax
from jax.experimental import pallas as pl
from jax.experimental.pallas import tpu as pltpu


# ----------------------------------------------------------------------------
# Pallas kernel: one batch element per grid step (channel-major tiles).
# ----------------------------------------------------------------------------
def lfm_kernel(zp_ref,        # (Cin, Lpad)      f32  zero-padded, flattened input
               conv_w_ref,    # (Cmid, 9*Cin)    bf16 BN-scale-folded 3x3 conv weights
               bn_shift_ref,  # (Cmid, 1)        f32  folded BN shift (bias)
               fc1_t_ref,     # (Chid, Cmid)     f32  attention MLP layer 1 (transposed)
               fc2_t_ref,     # (Cmid, Chid)     f32  attention MLP layer 2 (transposed)
               gate_ref,      # (1, Cmid)        f32  folded mu_w @ up_w
               out_ref,       # (Crgb+1, Lout)   f32  rows [:Crgb]=blend, [Crgb]=weight map
               zp16_ref,      # VMEM scratch (Cin, Lpad)    bf16
               patch_ref,     # VMEM scratch (9*Cin, Lout)  bf16
               *, H, W):
    Wp = W + 2                 # padded width == lane width of one image row
    Lout = H * Wp              # lane extent the kernel computes on
    Cin = zp_ref.shape[0]
    Crgb = out_ref.shape[0] - 1

    # --- cast the padded input to bf16 ONCE (amortizes the cast over 9 taps). -
    zp16_ref[...] = zp_ref[...].astype(jnp.bfloat16)

    # --- im2col assembled in VMEM (bf16): 9 statically shifted lane-slices. ---
    # Tap (dy, dx) of output pixel (y, x) is padded[(y+dy)*Wp + (x+dx)], i.e. a
    # contiguous slice of the flattened padded image starting at dy*Wp + dx.
    for k in range(9):
        dy, dx = divmod(k, 3)
        off = dy * Wp + dx
        patch_ref[k * Cin:(k + 1) * Cin, :] = zp16_ref[:, off:off + Lout]

    # --- fused 3x3 conv: single K = 9*Cin MXU matmul (bf16 in, f32 acc). ------
    x = jnp.dot(conv_w_ref[...], patch_ref[...],
                preferred_element_type=jnp.float32)                 # (Cmid, Lout)

    # --- BatchNorm shift (scale folded into weights) + LeakyReLU(0.2), f32. ---
    x = x + bn_shift_ref[...]
    x = jnp.maximum(x, 0.2 * x)

    # --- lane mask for the junk columns of the Wp-wide compute grid. ----------
    col = lax.broadcasted_iota(jnp.int32, (1, Lout), 1) % Wp
    valid = col < W                                                 # (1, Lout)

    # --- channel attention: masked spatial mean / max + shared 2-layer MLP. ---
    x1 = jnp.sum(jnp.where(valid, x, 0.0), axis=1, keepdims=True) * (1.0 / (H * W))
    x2 = jnp.max(jnp.where(valid, x, jnp.finfo(jnp.float32).min),
                 axis=1, keepdims=True)                             # (Cmid, 1)

    # Batched MLP: one pass over the (Cmid, 2) [mean | max] operand.
    v = jnp.concatenate([x1, x2], axis=1)                           # (Cmid, 2)
    h = jnp.dot(fc1_t_ref[...], v, preferred_element_type=jnp.float32)
    h = jnp.maximum(h, 0.2 * h)
    o = jnp.dot(fc2_t_ref[...], h, preferred_element_type=jnp.float32)  # (Cmid, 2)
    att = jax.nn.sigmoid(o[:, 0:1] + o[:, 1:2])                     # (Cmid, 1)
    z = x * att                                                     # (Cmid, Lout)

    # --- folded 1x1 convs (mu then fc_Up): one (1,Cmid)@(Cmid,Lout) + sigmoid. -
    wl = jax.nn.sigmoid(jnp.dot(gate_ref[...], z,
                                preferred_element_type=jnp.float32))  # (1, Lout)

    # --- rgb / inf for the blend: centre tap from the f32 input block. --------
    center = zp_ref[:, Wp + 1:Wp + 1 + Lout]                        # (Cin, Lout) f32
    rgb = center[:Crgb, :]
    inf = center[Crgb:, :]
    out_ref[:Crgb, :] = wl * rgb + (1.0 - wl) * inf
    out_ref[Crgb:, :] = wl


# ----------------------------------------------------------------------------
# Wrapper (NCHW in / NCHW out, PyTorch semantics). No layout transposes needed.
# ----------------------------------------------------------------------------
@jax.jit
def lfm_forward(rgb, inf, params):
    N, Crgb, H, W = rgb.shape
    Wp = W + 2                     # pad 1 left + 1 right
    Lout = H * Wp
    Lpad = (H + 3) * Wp            # pad 1 top + 2 bottom rows (the extra zero row
                                   # keeps every tap's static lane-slice in bounds)

    z = jnp.concatenate([rgb, inf], axis=1).astype(jnp.float32)      # (N, Cin, H, W)
    Cin = z.shape[1]
    zp = jnp.pad(z, ((0, 0), (0, 0), (1, 2), (1, 1)))                # (N, Cin, H+3, Wp)
    zp_flat = zp.reshape(N, Cin, Lpad)                               # channel-major

    conv_w = params["conv_w"]                                        # (9, Cin, Cmid)
    Cmid = conv_w.shape[2]
    # Fold BN scale into the conv weights; keep only the shift as a bias.
    w_folded = conv_w * params["bn_scale"][None, None, :]            # (9, Cin, Cmid)
    w_mat = jnp.transpose(w_folded, (2, 0, 1)).reshape(Cmid, 9 * Cin)
    w_mat = w_mat.astype(jnp.bfloat16)                               # bf16 MXU operands
    b_shift = params["bn_shift"].reshape(Cmid, 1)

    fc1_t = params["fc1_w"].T                                        # (Chid, Cmid)
    fc2_t = params["fc2_w"].T                                        # (Cmid, Chid)
    Chid = fc1_t.shape[0]
    # mu (1x1 conv -> latent) and fc_Up (1x1 conv -> 1) have no activation in
    # between: fold them into one gating vector (exact).
    gate = jnp.dot(params["mu_w"], params["up_w"],
                   precision=lax.Precision.HIGHEST).reshape(1, Cmid)

    kernel = functools.partial(lfm_kernel, H=H, W=W)

    fused = pl.pallas_call(
        kernel,
        out_shape=jax.ShapeDtypeStruct((N, Crgb + 1, Lout), jnp.float32),
        grid_spec=pltpu.PrefetchScalarGridSpec(
            num_scalar_prefetch=0,
            grid=(N,),
            in_specs=[
                pl.BlockSpec((None, Cin, Lpad), lambda b: (b, 0, 0)),
                pl.BlockSpec((Cmid, 9 * Cin), lambda b: (0, 0)),
                pl.BlockSpec((Cmid, 1), lambda b: (0, 0)),
                pl.BlockSpec((Chid, Cmid), lambda b: (0, 0)),
                pl.BlockSpec((Cmid, Chid), lambda b: (0, 0)),
                pl.BlockSpec((1, Cmid), lambda b: (0, 0)),
            ],
            out_specs=pl.BlockSpec((None, Crgb + 1, Lout), lambda b: (b, 0, 0)),
            scratch_shapes=[
                pltpu.VMEM((Cin, Lpad), jnp.bfloat16),        # bf16 padded input
                pltpu.VMEM((9 * Cin, Lout), jnp.bfloat16),    # bf16 im2col patches
            ],
        ),
        compiler_params=pltpu.CompilerParams(
            dimension_semantics=("parallel",),
            vmem_limit_bytes=64 * 1024 * 1024),
    )(zp_flat, w_mat, b_shift, fc1_t, fc2_t, gate)

    # Drop the two junk columns per row and split blend / weight map
    # (pure data movement).
    fused = fused.reshape(N, Crgb + 1, H, Wp)[:, :, :, :W]
    out = fused[:, :Crgb]
    wmap = fused[:, Crgb:]
    return out, wmap


# ----------------------------------------------------------------------------
# Deterministic parameter init (shapes implied by LFM.__init__).
# ----------------------------------------------------------------------------
def init_params(key, input_channels, reduction):
    cmid = input_channels // reduction          # fc_Down out_channels
    chid = cmid // 2                            # channel_fusion fc hidden
    lat = 8                                     # latent_dim

    ks = jax.random.split(key, 8)
    conv_w = 0.1 * jax.random.normal(ks[0], (9, input_channels, cmid), jnp.float32)
    gamma = 1.0 + 0.1 * jax.random.normal(ks[1], (cmid,), jnp.float32)
    beta = 0.05 * jax.random.normal(ks[2], (cmid,), jnp.float32)
    run_mean = 0.1 * jax.random.normal(ks[3], (cmid,), jnp.float32)
    run_var = 1.0 + 0.1 * jax.random.uniform(ks[4], (cmid,), jnp.float32)
    eps = 1e-5
    bn_scale = gamma / jnp.sqrt(run_var + eps)
    bn_shift = beta - run_mean * bn_scale

    fc1_w = 0.2 * jax.random.normal(ks[5], (cmid, chid), jnp.float32)
    fc2_w = 0.2 * jax.random.normal(ks[6], (chid, cmid), jnp.float32)
    mu_w = 0.2 * jax.random.normal(ks[7], (cmid, lat), jnp.float32)
    up_w = 0.2 * jax.random.normal(jax.random.fold_in(key, 99), (lat, 1), jnp.float32)

    return dict(conv_w=conv_w, bn_scale=bn_scale, bn_shift=bn_shift,
                fc1_w=fc1_w, fc2_w=fc2_w, mu_w=mu_w, up_w=up_w)


# ----------------------------------------------------------------------------
# Pure-JAX reference (numerical verification). Mirrors the kernel's bf16 conv
# operands (mixed-precision matmul, f32 accumulation); everything else f32.
# ----------------------------------------------------------------------------
def lfm_reference(rgb, inf, params):
    with jax.default_matmul_precision("highest"):
        z = jnp.concatenate([rgb, inf], axis=1).astype(jnp.float32)   # NCHW
        Cin = z.shape[1]
        Cmid = params["conv_w"].shape[2]
        w_folded = params["conv_w"] * params["bn_scale"][None, None, :]
        zq = z.astype(jnp.bfloat16).astype(jnp.float32)
        wq = w_folded.astype(jnp.bfloat16).astype(jnp.float32)
        w_hwio = wq.reshape(3, 3, Cin, Cmid)
        y = lax.conv_general_dilated(zq, w_hwio, (1, 1), "SAME",
                                     dimension_numbers=("NCHW", "HWIO", "NCHW"))
        y = y + params["bn_shift"][None, :, None, None]
        y = jnp.where(y > 0, y, 0.2 * y)
        x1 = y.mean(axis=(2, 3))
        x2 = y.max(axis=(2, 3))

        def fc(v):
            h = v @ params["fc1_w"]
            h = jnp.where(h > 0, h, 0.2 * h)
            return h @ params["fc2_w"]

        att = jax.nn.sigmoid(fc(x1) + fc(x2))
        zz = y * att[:, :, None, None]
        mu = jnp.einsum("nchw,cd->ndhw", zz, params["mu_w"])
        wl = jax.nn.sigmoid(jnp.einsum("ndhw,do->nohw", mu, params["up_w"]))
        out = wl * rgb.astype(jnp.float32) + (1.0 - wl) * inf.astype(jnp.float32)
        return out, wl


if __name__ == "__main__":
    # Small shapes consistent with the module: rgb/inf each (N=2, C=4, 16, 16)
    # -> cat gives input_channels = 8; reduction = 2 -> reduct_channel = 4.
    N, C, H, W = 2, 4, 16, 16
    input_channels = 2 * C
    reduction = 2

    key = jax.random.PRNGKey(0)
    k_rgb, k_inf, k_par = jax.random.split(key, 3)
    rgb = jax.random.normal(k_rgb, (N, C, H, W), jnp.float32)
    inf = jax.random.normal(k_inf, (N, C, H, W), jnp.float32)
    params = init_params(k_par, input_channels, reduction)

    out, wmap = lfm_forward(rgb, inf, params)
    out = jax.block_until_ready(out)
    wmap = jax.block_until_ready(wmap)

    out_exp, wmap_exp = lfm_reference(rgb, inf, params)
    assert out.shape == (N, C, H, W) and wmap.shape == (N, 1, H, W)
    assert jnp.allclose(out, out_exp, rtol=1e-3, atol=2e-3)
    assert jnp.allclose(wmap, wmap_exp, rtol=1e-3, atol=2e-3)

    print("KERNEL_OK")
</pallas_src>

<mosaic_0001>
module attributes {stable_mosaic.version = 11 : i64} {
  func.func @lfm_kernel(%arg0: i32, %arg1: memref<1x8x342xf32, #tpu.memory_space<vmem>>, %arg2: memref<4x72xbf16, #tpu.memory_space<vmem>>, %arg3: memref<4x1xf32, #tpu.memory_space<vmem>>, %arg4: memref<2x4xf32, #tpu.memory_space<vmem>>, %arg5: memref<4x2xf32, #tpu.memory_space<vmem>>, %arg6: memref<1x4xf32, #tpu.memory_space<vmem>>, %arg7: memref<1x5x288xf32, #tpu.memory_space<vmem>>, %arg8: memref<8x342xbf16, #tpu.memory_space<vmem>>, %arg9: memref<72x288xbf16, #tpu.memory_space<vmem>>) attributes {dimension_semantics = [#tpu.dimension_semantics<parallel>], iteration_bounds = array<i64: 2>, scalar_prefetch = 0 : i64, scratch_operands = 2 : i64, tpu.core_type = #tpu.core_type<tc>, window_params = [{transform_indices = @transform_0, window_bounds = array<i64: 1, 8, 342>}, {pipeline_mode = #tpu.pipeline_mode<synchronous>, transform_indices = @transform_1, window_bounds = array<i64: 4, 72>}, {pipeline_mode = #tpu.pipeline_mode<synchronous>, transform_indices = @transform_2, window_bounds = array<i64: 4, 1>}, {pipeline_mode = #tpu.pipeline_mode<synchronous>, transform_indices = @transform_3, window_bounds = array<i64: 2, 4>}, {pipeline_mode = #tpu.pipeline_mode<synchronous>, transform_indices = @transform_4, window_bounds = array<i64: 4, 2>}, {pipeline_mode = #tpu.pipeline_mode<synchronous>, transform_indices = @transform_5, window_bounds = array<i64: 1, 4>}, {transform_indices = @transform_6, window_bounds = array<i64: 1, 5, 288>}]} {
    %c0 = arith.constant 0 : index
    %c0_0 = arith.constant 0 : index
    %c0_1 = arith.constant 0 : index
    %0 = vector.load %arg1[%c0, %c0_0, %c0_1] : memref<1x8x342xf32, #tpu.memory_space<vmem>>, vector<1x8x342xf32>
    %1 = vector.shape_cast %0 : vector<1x8x342xf32> to vector<8x342xf32>
    %2 = arith.truncf %1 : vector<8x342xf32> to vector<8x342xbf16>
    %c0_2 = arith.constant 0 : index
    %c0_3 = arith.constant 0 : index
    %3 = vector.load %arg8[%c0_2, %c0_3] : memref<8x342xbf16, #tpu.memory_space<vmem>>, vector<8x342xbf16>
    tpu.vector_store %arg8[%c0_2, %c0_3], %2 {strides = array<i32>} : memref<8x342xbf16, #tpu.memory_space<vmem>>, vector<8x342xbf16>,
    %c0_4 = arith.constant 0 : index
    %c0_5 = arith.constant 0 : index
    %4 = vector.load %arg8[%c0_4, %c0_5] : memref<8x342xbf16, #tpu.memory_space<vmem>>, vector<8x288xbf16>
    %c0_6 = arith.constant 0 : index
    %c0_7 = arith.constant 0 : index
    %5 = vector.load %arg9[%c0_6, %c0_7] : memref<72x288xbf16, #tpu.memory_space<vmem>>, vector<8x288xbf16>
    tpu.vector_store %arg9[%c0_6, %c0_7], %4 {strides = array<i32>} : memref<72x288xbf16, #tpu.memory_space<vmem>>, vector<8x288xbf16>,
    %c0_8 = arith.constant 0 : index
    %c1 = arith.constant 1 : index
    %6 = vector.load %arg8[%c0_8, %c1] : memref<8x342xbf16, #tpu.memory_space<vmem>>, vector<8x288xbf16>
    %c8 = arith.constant 8 : index
    %c0_9 = arith.constant 0 : index
    %7 = vector.load %arg9[%c8, %c0_9] : memref<72x288xbf16, #tpu.memory_space<vmem>>, vector<8x288xbf16>
    tpu.vector_store %arg9[%c8, %c0_9], %6 {strides = array<i32>} : memref<72x288xbf16, #tpu.memory_space<vmem>>, vector<8x288xbf16>,
    %c0_10 = arith.constant 0 : index
    %c2 = arith.constant 2 : index
    %8 = vector.load %arg8[%c0_10, %c2] : memref<8x342xbf16, #tpu.memory_space<vmem>>, vector<8x288xbf16>
    %c16 = arith.constant 16 : index
    %c0_11 = arith.constant 0 : index
    %9 = vector.load %arg9[%c16, %c0_11] : memref<72x288xbf16, #tpu.memory_space<vmem>>, vector<8x288xbf16>
    tpu.vector_store %arg9[%c16, %c0_11], %8 {strides = array<i32>} : memref<72x288xbf16, #tpu.memory_space<vmem>>, vector<8x288xbf16>,
    %c0_12 = arith.constant 0 : index
    %c18 = arith.constant 18 : index
    %10 = vector.load %arg8[%c0_12, %c18] : memref<8x342xbf16, #tpu.memory_space<vmem>>, vector<8x288xbf16>
    %c24 = arith.constant 24 : index
    %c0_13 = arith.constant 0 : index
    %11 = vector.load %arg9[%c24, %c0_13] : memref<72x288xbf16, #tpu.memory_space<vmem>>, vector<8x288xbf16>
    tpu.vector_store %arg9[%c24, %c0_13], %10 {strides = array<i32>} : memref<72x288xbf16, #tpu.memory_space<vmem>>, vector<8x288xbf16>,
    %c0_14 = arith.constant 0 : index
    %c19 = arith.constant 19 : index
    %12 = vector.load %arg8[%c0_14, %c19] : memref<8x342xbf16, #tpu.memory_space<vmem>>, vector<8x288xbf16>
    %c32 = arith.constant 32 : index
    %c0_15 = arith.constant 0 : index
    %13 = vector.load %arg9[%c32, %c0_15] : memref<72x288xbf16, #tpu.memory_space<vmem>>, vector<8x288xbf16>
    tpu.vector_store %arg9[%c32, %c0_15], %12 {strides = array<i32>} : memref<72x288xbf16, #tpu.memory_space<vmem>>, vector<8x288xbf16>,
    %c0_16 = arith.constant 0 : index
    %c20 = arith.constant 20 : index
    %14 = vector.load %arg8[%c0_16, %c20] : memref<8x342xbf16, #tpu.memory_space<vmem>>, vector<8x288xbf16>
    %c40 = arith.constant 40 : index
    %c0_17 = arith.constant 0 : index
    %15 = vector.load %arg9[%c40, %c0_17] : memref<72x288xbf16, #tpu.memory_space<vmem>>, vector<8x288xbf16>
    tpu.vector_store %arg9[%c40, %c0_17], %14 {strides = array<i32>} : memref<72x288xbf16, #tpu.memory_space<vmem>>, vector<8x288xbf16>,
    %c0_18 = arith.constant 0 : index
    %c36 = arith.constant 36 : index
    %16 = vector.load %arg8[%c0_18, %c36] : memref<8x342xbf16, #tpu.memory_space<vmem>>, vector<8x288xbf16>
    %c48 = arith.constant 48 : index
    %c0_19 = arith.constant 0 : index
    %17 = vector.load %arg9[%c48, %c0_19] : memref<72x288xbf16, #tpu.memory_space<vmem>>, vector<8x288xbf16>
    tpu.vector_store %arg9[%c48, %c0_19], %16 {strides = array<i32>} : memref<72x288xbf16, #tpu.memory_space<vmem>>, vector<8x288xbf16>,
    %c0_20 = arith.constant 0 : index
    %c37 = arith.constant 37 : index
    %18 = vector.load %arg8[%c0_20, %c37] : memref<8x342xbf16, #tpu.memory_space<vmem>>, vector<8x288xbf16>
    %c56 = arith.constant 56 : index
    %c0_21 = arith.constant 0 : index
    %19 = vector.load %arg9[%c56, %c0_21] : memref<72x288xbf16, #tpu.memory_space<vmem>>, vector<8x288xbf16>
    tpu.vector_store %arg9[%c56, %c0_21], %18 {strides = array<i32>} : memref<72x288xbf16, #tpu.memory_space<vmem>>, vector<8x288xbf16>,
    %c0_22 = arith.constant 0 : index
    %c38 = arith.constant 38 : index
    %20 = vector.load %arg8[%c0_22, %c38] : memref<8x342xbf16, #tpu.memory_space<vmem>>, vector<8x288xbf16>
    %c64 = arith.constant 64 : index
    %c0_23 = arith.constant 0 : index
    %21 = vector.load %arg9[%c64, %c0_23] : memref<72x288xbf16, #tpu.memory_space<vmem>>, vector<8x288xbf16>
    tpu.vector_store %arg9[%c64, %c0_23], %20 {strides = array<i32>} : memref<72x288xbf16, #tpu.memory_space<vmem>>, vector<8x288xbf16>,
    %c0_24 = arith.constant 0 : index
    %c0_25 = arith.constant 0 : index
    %22 = vector.load %arg2[%c0_24, %c0_25] : memref<4x72xbf16, #tpu.memory_space<vmem>>, vector<4x72xbf16>
    %c0_26 = arith.constant 0 : index
    %c0_27 = arith.constant 0 : index
    %23 = vector.load %arg9[%c0_26, %c0_27] : memref<72x288xbf16, #tpu.memory_space<vmem>>, vector<72x288xbf16>
    %cst = arith.constant dense<0.000000e+00> : vector<4x288xf32>
    %24 = tpu.matmul %22, %23, %cst {dimension_numbers = #tpu.dot_dimension_numbers<[1], [0], [0], [1], [0, 0, 1, 1], [], []>} : vector<4x72xbf16>, vector<72x288xbf16>, vector<4x288xf32> -> vector<4x288xf32>
    %c0_28 = arith.constant 0 : index
    %c0_29 = arith.constant 0 : index
    %25 = vector.load %arg3[%c0_28, %c0_29] : memref<4x1xf32, #tpu.memory_space<vmem>>, vector<4x1xf32>
    %26 = vector.broadcast %25 : vector<4x1xf32> to vector<4x288xf32>
    %27 = arith.addf %24, %26 : vector<4x288xf32>
    %cst_30 = arith.constant 2.000000e-01 : f32
    %28 = vector.broadcast %cst_30 : f32 to vector<4x288xf32>
    %29 = arith.mulf %28, %27 : vector<4x288xf32>
    %30 = arith.maximumf %27, %29 : vector<4x288xf32>
    %31 = tpu.iota {dimensions = array<i32: 1>} : vector<1x288xi32>
    %c18_i32 = arith.constant 18 : i32
    %c0_i32 = arith.constant 0 : i32
    %32 = arith.cmpi eq, %c18_i32, %c0_i32 : i32
    %c1_i32 = arith.constant 1 : i32
    %33 = arith.select %32, %c1_i32, %c18_i32 : i32
    %34 = vector.broadcast %33 : i32 to vector<1x288xi32>
    %35 = arith.remsi %31, %34 : vector<1x288xi32>
    %c0_i32_31 = arith.constant 0 : i32
    %36 = vector.broadcast %c0_i32_31 : i32 to vector<1x288xi32>
    %37 = arith.cmpi ne, %35, %36 : vector<1x288xi32>
    %c0_i32_32 = arith.constant 0 : i32
    %38 = vector.broadcast %c0_i32_32 : i32 to vector<1x288xi32>
    %39 = arith.cmpi slt, %35, %38 : vector<1x288xi32>
    %c0_i32_33 = arith.constant 0 : i32
    %40 = arith.cmpi slt, %33, %c0_i32_33 : i32
    %41 = vector.broadcast %40 : i1 to vector<1x288xi1>
    %42 = vector.broadcast %41 : vector<1x288xi1> to vector<1x288xi1>
    %43 = arith.xori %39, %42 : vector<1x288xi1>
    %44 = arith.andi %43, %37 : vector<1x288xi1>
    %45 = vector.broadcast %33 : i32 to vector<1x288xi32>
    %46 = arith.addi %35, %45 : vector<1x288xi32>
    %47 = arith.select %44, %46, %35 : vector<1x288xi1>, vector<1x288xi32>
    %c16_i32 = arith.constant 16 : i32
    %48 = vector.broadcast %c16_i32 : i32 to vector<1x288xi32>
    %49 = arith.cmpi slt, %47, %48 : vector<1x288xi32>
    %cst_34 = arith.constant 0.000000e+00 : f32
    %50 = vector.shape_cast %49 : vector<1x288xi1> to vector<1x288xi1>
    %51 = vector.broadcast %50 : vector<1x288xi1> to vector<4x288xi1>
    %52 = vector.broadcast %cst_34 : f32 to vector<4x288xf32>
    %53 = arith.select %51, %30, %52 : vector<4x288xi1>, vector<4x288xf32>
    %cst_35 = arith.constant dense<0.000000e+00> : vector<4xf32>
    %54 = vector.multi_reduction <add>, %53, %cst_35 [1] : vector<4x288xf32> to vector<4xf32>
    %55 = vector.shape_cast %54 : vector<4xf32> to vector<4x1xf32>
    %cst_36 = arith.constant 3.906250e-03 : f32
    %56 = vector.broadcast %cst_36 : f32 to vector<4x1xf32>
    %57 = arith.mulf %55, %56 : vector<4x1xf32>
    %cst_37 = arith.constant -3.40282347E+38 : f32
    %58 = vector.shape_cast %49 : vector<1x288xi1> to vector<1x288xi1>
    %59 = vector.broadcast %58 : vector<1x288xi1> to vector<4x288xi1>
    %60 = vector.broadcast %cst_37 : f32 to vector<4x288xf32>
    %61 = arith.select %59, %30, %60 : vector<4x288xi1>, vector<4x288xf32>
    %cst_38 = arith.constant dense<0xFF800000> : vector<4xf32>
    %62 = vector.multi_reduction <maximumf>, %61, %cst_38 [1] : vector<4x288xf32> to vector<4xf32>
    %63 = vector.shape_cast %62 : vector<4xf32> to vector<4x1xf32>
    %64 = tpu.concatenate %57, %63 in 1 : vector<4x1xf32>, vector<4x1xf32> -> vector<4x2xf32>
    %c0_39 = arith.constant 0 : index
    %c0_40 = arith.constant 0 : index
    %65 = vector.load %arg4[%c0_39, %c0_40] : memref<2x4xf32, #tpu.memory_space<vmem>>, vector<2x4xf32>
    %cst_41 = arith.constant dense<0.000000e+00> : vector<2x2xf32>
    %66 = tpu.matmul %65, %64, %cst_41 {dimension_numbers = #tpu.dot_dimension_numbers<[1], [0], [0], [1], [0, 0, 1, 1], [], []>} : vector<2x4xf32>, vector<4x2xf32>, vector<2x2xf32> -> vector<2x2xf32>
    %cst_42 = arith.constant 2.000000e-01 : f32
    %67 = vector.broadcast %cst_42 : f32 to vector<2x2xf32>
    %68 = arith.mulf %67, %66 : vector<2x2xf32>
    %69 = arith.maximumf %66, %68 : vector<2x2xf32>
    %c0_43 = arith.constant 0 : index
    %c0_44 = arith.constant 0 : index
    %70 = vector.load %arg5[%c0_43, %c0_44] : memref<4x2xf32, #tpu.memory_space<vmem>>, vector<4x2xf32>
    %cst_45 = arith.constant dense<0.000000e+00> : vector<4x2xf32>
    %71 = tpu.matmul %70, %69, %cst_45 {dimension_numbers = #tpu.dot_dimension_numbers<[1], [0], [0], [1], [0, 0, 1, 1], [], []>} : vector<4x2xf32>, vector<2x2xf32>, vector<4x2xf32> -> vector<4x2xf32>
    %72 = vector.extract_strided_slice %71 {offsets = [0, 0], sizes = [4, 1], strides = [1, 1]} : vector<4x2xf32> to vector<4x1xf32>
    %73 = vector.extract_strided_slice %71 {offsets = [0, 1], sizes = [4, 1], strides = [1, 1]} : vector<4x2xf32> to vector<4x1xf32>
    %74 = arith.addf %72, %73 : vector<4x1xf32>
    %75 = arith.negf %74 : vector<4x1xf32>
    %76 = math.exp %75 : vector<4x1xf32>
    %cst_46 = arith.constant 1.000000e+00 : f32
    %77 = vector.broadcast %cst_46 : f32 to vector<4x1xf32>
    %78 = arith.addf %77, %76 : vector<4x1xf32>
    %79 = arith.divf %77, %78 : vector<4x1xf32>
    %80 = vector.broadcast %79 : vector<4x1xf32> to vector<4x288xf32>
    %81 = arith.mulf %30, %80 : vector<4x288xf32>
    %c0_47 = arith.constant 0 : index
    %c0_48 = arith.constant 0 : index
    %82 = vector.load %arg6[%c0_47, %c0_48] : memref<1x4xf32, #tpu.memory_space<vmem>>, vector<1x4xf32>
    %cst_49 = arith.constant dense<0.000000e+00> : vector<1x288xf32>
    %83 = tpu.matmul %82, %81, %cst_49 {dimension_numbers = #tpu.dot_dimension_numbers<[1], [0], [0], [1], [0, 0, 1, 1], [], []>} : vector<1x4xf32>, vector<4x288xf32>, vector<1x288xf32> -> vector<1x288xf32>
    %84 = arith.negf %83 : vector<1x288xf32>
    %85 = math.exp %84 : vector<1x288xf32>
    %cst_50 = arith.constant 1.000000e+00 : f32
    %86 = vector.broadcast %cst_50 : f32 to vector<1x288xf32>
    %87 = arith.addf %86, %85 : vector<1x288xf32>
    %88 = arith.divf %86, %87 : vector<1x288xf32>
    %c0_51 = arith.constant 0 : index
    %c0_52 = arith.constant 0 : index
    %c19_53 = arith.constant 19 : index
    %89 = vector.load %arg1[%c0_51, %c0_52, %c19_53] : memref<1x8x342xf32, #tpu.memory_space<vmem>>, vector<1x8x288xf32>
    %90 = vector.shape_cast %89 : vector<1x8x288xf32> to vector<8x288xf32>
    %91 = vector.extract_strided_slice %90 {offsets = [0, 0], sizes = [4, 288], strides = [1, 1]} : vector<8x288xf32> to vector<4x288xf32>
    %92 = vector.extract_strided_slice %90 {offsets = [4, 0], sizes = [4, 288], strides = [1, 1]} : vector<8x288xf32> to vector<4x288xf32>
    %93 = vector.broadcast %88 : vector<1x288xf32> to vector<4x288xf32>
    %94 = arith.mulf %93, %91 : vector<4x288xf32>
    %cst_54 = arith.constant 1.000000e+00 : f32
    %95 = vector.broadcast %cst_54 : f32 to vector<1x288xf32>
    %96 = arith.subf %95, %88 : vector<1x288xf32>
    %97 = vector.broadcast %96 : vector<1x288xf32> to vector<4x288xf32>
    %98 = arith.mulf %97, %92 : vector<4x288xf32>
    %99 = arith.addf %94, %98 : vector<4x288xf32>
    %c0_55 = arith.constant 0 : index
    %c0_56 = arith.constant 0 : index
    %c0_57 = arith.constant 0 : index
    %100 = vector.load %arg7[%c0_55, %c0_56, %c0_57] : memref<1x5x288xf32, #tpu.memory_space<vmem>>, vector<1x4x288xf32>
    %101 = vector.shape_cast %100 : vector<1x4x288xf32> to vector<4x288xf32>
    %102 = vector.shape_cast %99 : vector<4x288xf32> to vector<1x4x288xf32>
    tpu.vector_store %arg7[%c0_55, %c0_56, %c0_57], %102 {strides = array<i32>} : memref<1x5x288xf32, #tpu.memory_space<vmem>>, vector<1x4x288xf32>,
    %c0_58 = arith.constant 0 : index
    %c4 = arith.constant 4 : index
    %c0_59 = arith.constant 0 : index
    %103 = vector.load %arg7[%c0_58, %c4, %c0_59] : memref<1x5x288xf32, #tpu.memory_space<vmem>>, vector<1x1x288xf32>
    %104 = vector.shape_cast %103 : vector<1x1x288xf32> to vector<1x288xf32>
    %105 = vector.shape_cast %88 : vector<1x288xf32> to vector<1x1x288xf32>
    tpu.vector_store %arg7[%c0_58, %c4, %c0_59], %105 {strides = array<i32>} : memref<1x5x288xf32, #tpu.memory_space<vmem>>, vector<1x1x288xf32>,
    return
  }
  func.func @transform_0(%arg0: i32) -> (i32, i32, i32) {
    %c0_i32 = arith.constant 0 : i32
    %c0_i32_0 = arith.constant 0 : i32
    %c0_i32_1 = arith.constant 0 : i32
    return %arg0, %c0_i32, %c0_i32_0 : i32, i32, i32
  }
  func.func @transform_1(%arg0: i32) -> (i32, i32) {
    %c0_i32 = arith.constant 0 : i32
    %c0_i32_0 = arith.constant 0 : i32
    %c0_i32_1 = arith.constant 0 : i32
    return %c0_i32, %c0_i32_0 : i32, i32
  }
  func.func @transform_2(%arg0: i32) -> (i32, i32) {
    %c0_i32 = arith.constant 0 : i32
    %c0_i32_0 = arith.constant 0 : i32
    %c0_i32_1 = arith.constant 0 : i32
    return %c0_i32, %c0_i32_0 : i32, i32
  }
  func.func @transform_3(%arg0: i32) -> (i32, i32) {
    %c0_i32 = arith.constant 0 : i32
    %c0_i32_0 = arith.constant 0 : i32
    %c0_i32_1 = arith.constant 0 : i32
    return %c0_i32, %c0_i32_0 : i32, i32
  }
  func.func @transform_4(%arg0: i32) -> (i32, i32) {
    %c0_i32 = arith.constant 0 : i32
    %c0_i32_0 = arith.constant 0 : i32
    %c0_i32_1 = arith.constant 0 : i32
    return %c0_i32, %c0_i32_0 : i32, i32
  }
  func.func @transform_5(%arg0: i32) -> (i32, i32) {
    %c0_i32 = arith.constant 0 : i32
    %c0_i32_0 = arith.constant 0 : i32
    %c0_i32_1 = arith.constant 0 : i32
    return %c0_i32, %c0_i32_0 : i32, i32
  }
  func.func @transform_6(%arg0: i32) -> (i32, i32, i32) {
    %c0_i32 = arith.constant 0 : i32
    %c0_i32_0 = arith.constant 0 : i32
    %c0_i32_1 = arith.constant 0 : i32
    return %arg0, %c0_i32, %c0_i32_0 : i32, i32, i32
  }
}

</mosaic_0001>

<bundles_post_ra>
// kernel: lfm_forward.1
= control target key start
LH: loop header
LB: loop body
LE: loop exit
PB: predicated region body
PF: predicated region fallthrough
CT: control target
= control target key end

     0   :  { %11 = vsyncpa [#allocation5], 0  ;;  %s2360_s0 = inlined_call_operand.hbm [shape: f32[2,8,342], index: 0, kind: input, shape index: {}]   ;;  %s2361_s1 = inlined_call_operand.hbm [shape: bf16[4,72], index: 1, kind: input, shape index: {}]   ;;  %s2362_s2 = inlined_call_operand.hbm [shape: f32[4,1], index: 2, kind: input, shape index: {}]   ;;  %s2363_s3 = inlined_call_operand.hbm [shape: f32[2,4], index: 3, kind: input, shape index: {}]   ;;  %s2364_s4 = inlined_call_operand.hbm [shape: f32[4,2], index: 4, kind: input, shape index: {}]   ;;  %s2365_s5 = inlined_call_operand.hbm [shape: f32[1,4], index: 5, kind: input, shape index: {}]   ;;  %s2366_s6 = inlined_call_operand.hbm [shape: f32[2,5,288], index: 6, kind: output, shape index: {}]  }
   0x1   :  { %13 = vsyncpa [#allocation5 + $0x1], 0 }
   0x2   :  { %14 = vsyncpa [#allocation8], 0 }
   0x3   :  { %15 = vsyncpa [#allocation11], 0 }
   0x4   :  { %16 = vsyncpa [#allocation14], 0 }
   0x5   :  { %17 = vsyncpa [#allocation6], 0 }
   0x6   :  { %19 = vsyncpa [#allocation6 + $0x1], 0  ;;  %s1903_s21 = smov 0   ;;  %s1905_s22 = smov 0  }
   0x7   :  { %s1907_s23 = smov 0   ;;  %s1909_s24 = smov 0  }
   0x8 LB: > { %s1849_s25 = smov [#allocation7]   ;;  %s1924_s27 = sadd.s32 4294967295, %s1847_s24   ;;  %s1847_s24 = sphi %s1909_s24, %s2401_s24   ;;  %s1843_s23 = sphi %s1907_s23, %s2400_s23   ;;  %s1839_s22 = sphi %s1905_s22, %s2399_s22   ;;  %s1835_s21 = sphi %s1903_s21, %s2398_s21  }
   0x9   : > { %s200_s26 = sshll.u32 %s1849_s25, 4  ;;  %p1364_p0 = scmp.ge.s32.totalorder %s1847_s24, 1  ;;  %s1929_s26 = int_to_ptr.vmem [resolvable:$true] %s200_s26 }
   0xa   : > { %p2367_p1 = scmp.eq.s32.totalorder %s1924_s27, 0  ;;  %p187_p2 = scmp.lt.s32.totalorder %s1847_s24, 3 }
   0xb   : > { %s1850_s29 = smov [#allocation10]   ;;  %s1851_s7 = smov [#allocation9]  }
   0xc   : > { %p1931_p3 = pnand %p1364_p0, %p187_p2  ;;  %s222_s30 = sshll.u32 %s1850_s29, 4  ;;  %s1938_s30 = int_to_ptr.vmem [resolvable:$true] %s222_s30 }
   0xd   : > { %s211_s8 = sshll.u32 %s1851_s7, 4  ;;  %s1852_s10 = smov [#allocation12]   ;;  %s1946_s8 = int_to_ptr.vmem [resolvable:$true] %s211_s8 }
   0xe   : > { %s2370_s28 = scalar_select %p1931_p3, 1, 0 }
   0xf   : > { %p1492_p5 = pneg %p1931_p3  ;;  %s1948_s11 = sshll.u32 %s1852_s10, 4  ;;  %s234_s11 = int_to_ptr.vmem [resolvable:$true] %s1948_s11 }
  0x10   : > { %s1599_s14 = scalar_lea.hbm %s2361_s1, 32 }
  0x11   : > { %p1942_p6 = pnand %p1492_p5, %p2367_p1  ;;  %p1600_p7 = scmp.ne.s32.totalorder %s2361_s1, %s1599_s14 }
  0x12   : > { %p1606_p11 = scmp.lt.u32.totalorder %s1599_s14, %s2361_s1 }
  0x13   : > { %p1958_p8 = pneg %p1942_p6 }
  0x15   : > { %p1602_p9 = pnand %p1958_p8, %p1600_p7 }
  0x17   : > { %p1603_p10 = pneg %p1602_p9 }
  0x19   : > { %p1608_p12 = pnand %p1606_p11, %p1603_p10 }
  0x1b   : > { %1611 = shalt.err (!%p1608_p12)
}
  0x1c   : > { %s1612_s20 = scalar_lea.vmem %s1929_s26, 32  ;;  %p1620_p5 = scmp.lt.s32.totalorder %s1929_s26, %s1929_s26 }
  0x1d   : > { %p1613_p13 = scmp.ne.s32.totalorder %s1929_s26, %s1612_s20  ;;  %p1621_p4 = scmp.lt.s32.totalorder %s1612_s20, %s1612_s20 }
  0x1f   : > { %p1615_p0 = pnand %p1613_p13, %p1958_p8  ;;  %p1622_p7 = por %p1621_p4, %p1620_p5 }
  0x21   : > { %p1616_p2 = pneg %p1615_p0 }
  0x23   : > { %p1623_p9 = pnand %p1622_p7, %p1616_p2 }
  0x25   : > { %1626 = shalt.err (!%p1623_p9)
}
  0x26   : > { %1495 = dma.hbm_to_vmem [thread:$0]  (!%p1942_p6), %s2361_s1, 32, %s1929_s26, [#allocation8]  }
  0x27   : > { %s1627_s12 = scalar_lea.hbm %s2363_s3, 32 }
  0x28   : > { %p1628_p10 = scmp.ne.s32.totalorder %s2363_s3, %s1627_s12  ;;  %p1634_p12 = scmp.lt.u32.totalorder %s1627_s12, %s2363_s3 }
  0x2a   : > { %p1630_p4 = pnand %p1628_p10, %p1958_p8 }
  0x2c   : > { %p1631_p11 = pneg %p1630_p4 }
  0x2e   : > { %p1636_p13 = pnand %p1634_p12, %p1631_p11 }
  0x30   : > { %1639 = shalt.err (!%p1636_p13)
}
  0x31   : > { %s1640_s26 = scalar_lea.vmem %s1938_s30, 32  ;;  %p1648_p7 = scmp.lt.s32.totalorder %s1938_s30, %s1938_s30 }
  0x32   : > { %p1641_p0 = scmp.ne.s32.totalorder %s1938_s30, %s1640_s26  ;;  %p1649_p9 = scmp.lt.s32.totalorder %s1640_s26, %s1640_s26 }
  0x34   : > { %p1643_p2 = pnand %p1641_p0, %p1958_p8  ;;  %p1650_p10 = por %p1649_p9, %p1648_p7 }
  0x36   : > { %p1644_p5 = pneg %p1643_p2 }
  0x38   : > { %p1651_p4 = pnand %p1650_p10, %p1644_p5 }
  0x3a   : > { %1654 = shalt.err (!%p1651_p4)
}
  0x3b   : > { %1501 = dma.hbm_to_vmem [thread:$0]  (!%p1942_p6), %s2363_s3, 32, %s1938_s30, [#allocation11]  }
  0x3c   : > { %s1655_s29 = scalar_lea.hbm %s2362_s2, 64 }
  0x3d   : > { %p1656_p11 = scmp.ne.s32.totalorder %s2362_s2, %s1655_s29  ;;  %p1662_p0 = scmp.lt.u32.totalorder %s1655_s29, %s2362_s2 }
  0x3f   : > { %p1658_p12 = pnand %p1656_p11, %p1958_p8 }
  0x41   : > { %p1659_p13 = pneg %p1658_p12 }
  0x43   : > { %p1664_p2 = pnand %p1662_p0, %p1659_p13 }
  0x45   : > { %1667 = shalt.err (!%p1664_p2)
}
  0x46   : > { %s1668_s30 = scalar_lea.vmem %s1946_s8, 64  ;;  %p1676_p10 = scmp.lt.s32.totalorder %s1946_s8, %s1946_s8 }
  0x47   : > { %p1669_p5 = scmp.ne.s32.totalorder %s1946_s8, %s1668_s30  ;;  %p1677_p4 = scmp.lt.s32.totalorder %s1668_s30, %s1668_s30 }
  0x49   : > { %p1671_p7 = pnand %p1669_p5, %p1958_p8  ;;  %p1678_p11 = por %p1677_p4, %p1676_p10 }
  0x4b   : > { %p1672_p9 = pneg %p1671_p7 }
  0x4d   : > { %p1679_p12 = pnand %p1678_p11, %p1672_p9 }
  0x4f   : > { %1682 = shalt.err (!%p1679_p12)
}
  0x50   : > { %1498 = dma.hbm_to_vmem [thread:$0]  (!%p1942_p6), %s2362_s2, 64, %s1946_s8, [#allocation8]  }
  0x51   : > { %s1853_s16 = smov [#allocation13]   ;;  %s1683_s20 = scalar_lea.hbm %s2364_s4, 64 }
  0x52   : > { %s244_s26 = sshll.u32 %s1853_s16, 4  ;;  %p1684_p13 = scmp.ne.s32.totalorder %s2364_s4, %s1683_s20  ;;  %s245_s26 = int_to_ptr.vmem [resolvable:$true] %s244_s26 }
  0x53   : > { %p1690_p5 = scmp.lt.u32.totalorder %s1683_s20, %s2364_s4 }
  0x54   : > { %p1686_p0 = pnand %p1684_p13, %p1958_p8 }
  0x56   : > { %p1687_p2 = pneg %p1686_p0 }
  0x58   : > { %p1692_p7 = pnand %p1690_p5, %p1687_p2 }
  0x5a   : > { %1695 = shalt.err (!%p1692_p7)
}
  0x5b   : > { %s1696_s8 = scalar_lea.vmem %s234_s11, 64  ;;  %p1704_p11 = scmp.lt.s32.totalorder %s234_s11, %s234_s11 }
  0x5c   : > { %p1697_p9 = scmp.ne.s32.totalorder %s234_s11, %s1696_s8  ;;  %p1705_p12 = scmp.lt.s32.totalorder %s1696_s8, %s1696_s8 }
  0x5e   : > { %p1699_p10 = pnand %p1697_p9, %p1958_p8  ;;  %p1706_p1 = por %p1705_p12, %p1704_p11 }
  0x60   : > { %p1700_p4 = pneg %p1699_p10 }
  0x62   : > { %p1707_p3 = pnand %p1706_p1, %p1700_p4 }
  0x64   : > { %1710 = shalt.err (!%p1707_p3)
}
  0x65   : > { %1504 = dma.hbm_to_vmem [thread:$0]  (!%p1942_p6), %s2364_s4, 64, %s234_s11, [#allocation11]  }
  0x66   : > { %s1711_s15 = scalar_lea.hbm %s2365_s5, 16 }
  0x67   : > { %p1712_p13 = scmp.ne.s32.totalorder %s2365_s5, %s1711_s15  ;;  %p1718_p3 = scmp.lt.u32.totalorder %s1711_s15, %s2365_s5 }
  0x69   : > { %p1714_p0 = pnand %p1712_p13, %p1958_p8 }
  0x6b   : > { %p1715_p1 = pneg %p1714_p0 }
  0x6d   : > { %p1720_p2 = pnand %p1718_p3, %p1715_p1 }
  0x6f   : > { %1723 = shalt.err (!%p1720_p2)
}
  0x70   : > { %s1724_s25 = scalar_lea.vmem %s245_s26, 16  ;;  %s1731_s11 = scalar_lea.vmem %s245_s26, 32 }
  0x71   : > { %p1725_p5 = scmp.ne.s32.totalorder %s245_s26, %s1724_s25  ;;  %p1732_p10 = scmp.lt.s32.totalorder %s245_s26, %s245_s26 }
  0x72   : > { %p1733_p4 = scmp.lt.s32.totalorder %s1731_s11, %s1724_s25 }
  0x73   : > { %p1727_p7 = pnand %p1725_p5, %p1958_p8 }
  0x74   : > { %p1734_p11 = por %p1733_p4, %p1732_p10 }
  0x75   : > { %p1728_p9 = pneg %p1727_p7 }
  0x77   : > { %p1735_p12 = pnand %p1734_p11, %p1728_p9 }
  0x79   : > { %1738 = shalt.err (!%p1735_p12)
}
  0x7a   : > { %1507 = dma.hbm_to_vmem [thread:$0]  (!%p1942_p6), %s2365_s5, 16, %s245_s26, [#allocation14]  }
  0x7b   : > { %s1363_s17 = sadd.s32 4294967294, %s1847_s24   ;;  %s2064_s9 = sadd.s32 1, %s1847_s24  }
  0x7c   : > { %s32_s10 = sadd.s32 1, %s1843_s23  ;;  %s29_s8 = ssub.s32 %s1847_s24, %s2064_s9 }
  0x7d   : > { %p39_p8 = scmp.ne.s32.totalorder %s1843_s23, %s1839_s22  ;;  %p30_p13 = scmp.eq.s32.totalorder %s29_s8, 0 }
  0x7e   : > { %p40_p0 = scmp.eq.s32.totalorder %s1847_s24, 0  ;;  %p45_p1 = scmp.ne.s32.totalorder %s1839_s22, %s1835_s21 }
  0x7f   : > { %p174_p3 = scmp.eq.s32.totalorder %s1924_s27, 1  ;;  %p2373_p5 = scmp.eq.s32.totalorder %s1924_s27, 0 }
  0x80   : > { %s2076_s12 = scalar_select %p30_p13, %s1843_s23, %s32_s10  }
  0x81   : > { %p41_p2 = por %p40_p0, %p39_p8  ;;  %p2080_p7 = por %p2373_p5, %p45_p1 }
  0x82   : > { %p2084_p6 = por %p174_p3, %p39_p8  ;;  %p180_p9 = scmp.eq.s32.totalorder %s1363_s17, 1 }
  0x83   : > { %p1521_p10 = scmp.lt.s32.totalorder %s1847_s24, 2  ;;  %s255_s30 = sand.u32 1, %s1843_s23  }
  0x84   : > { %s2375_s26 = scalar_select %p2084_p6, 1, 0 }
  0x85   : > { %p2090_p4 = por %p180_p9, %p45_p1  ;;  %s1458_s15 = smul.u32 24, %s255_s30 }
  0x86   : > { %p2094_p11 = pnand %p1521_p10, %p41_p2  ;;  %s1459_s18 = smul.u32 384, %s1847_s24 }
  0x87   : > { %s2376_s14 = scalar_select %p2090_p4, 1, 0 }
  0x88   : > { %s2102_s25 = scalar_lea.hbm %s2360_s0, %s1459_s18  ;;  %s259_s11 = scalar_lea.vmem [#allocation4], %s1458_s15 }
  0x89   : > { %s267_s29 = sshll.u32 %s259_s11, 4  ;;  %s256_s7 = scalar_lea.sflag [#allocation5], %s255_s30  ;;  %s2104_s29 = int_to_ptr.vmem [resolvable:$true] %s267_s29 }
  0x8a   : > { %s1739_s17 = scalar_lea.hbm %s2102_s25, 384  ;;  %p1741_p8 = pneg %p2094_p11 }
  0x8b   : > { %p1740_p12 = scmp.ne.s32.totalorder %s2102_s25, %s1739_s17  ;;  %s1744_s18 = scalar_lea.hbm %s2360_s0, 768 }
  0x8c   : > { %p1745_p1 = scmp.lt.u32.totalorder %s2102_s25, %s2360_s0  ;;  %p1746_p3 = scmp.lt.u32.totalorder %s1744_s18, %s1739_s17 }
  0x8d   : > { %p1742_p13 = pnand %p1741_p8, %p1740_p12  ;;  %p1748_p5 = scmp.lt.u32.totalorder %s1739_s17, %s2102_s25 }
  0x8e   : > { %p1747_p2 = por %p1746_p3, %p1745_p1 }
  0x8f   : > { %p1743_p0 = pneg %p1742_p13 }
  0x90   : > { %p1749_p9 = por %p1748_p5, %p1747_p2 }
  0x92   : > { %p1750_p10 = pnand %p1749_p9, %p1743_p0 }
  0x94   : > { %1753 = shalt.err (!%p1750_p10)
}
  0x95   : > { %s1754_s30 = scalar_lea.vmem %s2104_s29, 384  ;;  %s1854_s15 = smov [#allocation4]  }
  0x96   : > { %p1755_p12 = scmp.ne.s32.totalorder %s2104_s29, %s1754_s30  ;;  %s1759_s11 = sshll.u32 %s1854_s15, 4  ;;  %s1760_s11 = int_to_ptr.vmem [resolvable:$false] %s1759_s11 }
  0x97   : > { %s1761_s10 = scalar_lea.vmem %s1760_s11, 768  ;;  %p1762_p6 = scmp.lt.s32.totalorder %s2104_s29, %s1760_s11 }
  0x98   : > { %p1757_p13 = pnand %p1755_p12, %p1741_p8  ;;  %p1763_p1 = scmp.lt.s32.totalorder %s1761_s10, %s1754_s30 }
  0x9a   : > { %p1758_p4 = pneg %p1757_p13  ;;  %p1764_p3 = por %p1763_p1, %p1762_p6 }
  0x9c   : > { %p1765_p2 = pnand %p1764_p3, %p1758_p4 }
  0x9e   : > { %1768 = shalt.err (!%p1765_p2)
}
  0x9f   : > { %1511 = dma.hbm_to_vmem [thread:$0]  (!%p2094_p11), %s2102_s25, 384, %s2104_s29, %s256_s7  }
  0xa0   : > { %p2378_p0 = scmp.ne.s32.totalorder %s2370_s28, 0 }
  0xa1   : > { %s2134_s17 = sand.u32 (!%p2378_p0), 1, %s1839_s22  }
  0xa2   : > { %276 = sbr.rel (%p2378_p0) target bundleno = 1678 (0x68e), region = 44  ;;  %s279_s18 = scalar_lea.sflag (!%p2378_p0), [#allocation5], %s2134_s17 }
  0xa3   : > { %s1460_s8 = smul.u32 (!%p2378_p0), 24, %s2134_s17 }
  0xa5   : > { %s282_s19 = scalar_lea.vmem (!%p2378_p0), [#allocation4], %s1460_s8 }
  0xa9   : > { %1814 = dma.done.wait (%p2080_p7), %s279_s18, 384  }
  0xaa   : > { %1816 = vsyncadd (%p2080_p7), %s279_s18, 4294966912  ;;  %p2379_p6 = scmp.eq.s32.totalorder %s1924_s27, 0 }
  0xac   : > { %1818 = dma.done.wait (%p2379_p6), [#allocation8], 96   ;;  %p2380_p4 = pmov %p2379_p6 }
  0xae   : > { %1820 = vsyncadd (%p2380_p4), [#allocation8], 4294967200  ;;  %p2381_p11 = pmov %p2380_p4 }
  0xaf   : > { %p2382_p8 = pmov %p2380_p4 }
  0xb0   : > { %1822 = dma.done.wait (%p2381_p11), [#allocation11], 96  }
  0xb1   : > { %1824 = vsyncadd (%p2382_p8), [#allocation11], 4294967200  ;;  %p2383_p5 = pmov %p2380_p4 }
  0xb2   : > { %p2384_p9 = pmov %p2380_p4 }
  0xb3   : > { %1826 = dma.done.wait (%p2383_p5), [#allocation14], 16  }
  0xb4   : > { %1828 = vsyncadd (%p2384_p9), [#allocation14], 4294967280  ;;  %v2156_v0 = vld [vmem:[%s282_s19] sm:$0xff]  ;;  %v2158_v1 = vld [vmem:[%s282_s19 + $0x8] sm:$0xff]  ;;  %vm349_vm0 = vcmask 699392   ;;  %s1855_s28 = smov 126  }
  0xb5   : > { %v2160_v2 = vld [vmem:[%s282_s19 + $0x10] sm:$0xff]  ;;  %v2164_v3 = vpack.c.bf16 %v2158_v1, %v2156_v0  ;;  %s1856_s13 = smov 127   ;;  %v1857_v5 = vmov 0.0   ;;  %vm354_vm1 = vcmask 257024   ;;  %s1858_s16 = smov 110   ;;  %v1863_v15 = vmov 0  }
  0xb6   : > { %v1416_v4 = vpack.c.bf16 %v2160_v2, %v2160_v2  ;;  %1429 = vmatprep.subr.bf16.mxu1 %v1857_v5  ;;  %s1859_s25 = smov 109   ;;  %s1860_s29 = smov 108   ;;  %636 = vmatprep.mubr.bf16.mxu0 %v1863_v15  ;;  %vm1864_vm2 = vmmov 0   ;;  %v512_v16 = vld [vmem:[#allocation9] sm:$0xf]  ;;  %vm366_vm3 = vcmask 1043456  }
  0xb7   : > { %378 = vrot.lane.b32.xlu1 %v2164_v3, %s1855_s28  ;;  %360 = vrot.lane.b32.xlu0 %v2164_v3, %s1856_s13  ;;  %s1861_s7 = smov 92   ;;  %s1862_s20 = smov 91   ;;  %vm385_vm4 = vcmask 1031168   ;;  %vm368_vm5 = vcmask 1039360   ;;  %vm402_vm6 = vcmask 900096   ;;  %vm419_vm7 = vcmask 891904  }
  0xb8   : > { %350 = vst.msk [vmem:[#allocation2 + $0x8] sm:$0xf] %vm349_vm0, %v1416_v4  ;;  %1577 = vset.pattern.permute.xlu0 %v1863_v15  ;;  %1439 = vmatprep.mubr.msk.bf16.mxu1 %vm1864_vm2, %v1857_v5  ;;  %s1865_s30 = smov 90   ;;  %vm436_vm8 = vcmask 883712   ;;  %vm453_vm9 = vcmask 752640   ;;  %vm470_vm10 = vcmask 744448  }
  0xb9   : > { %vm487_vm11 = vcmask 736256   ;;  %vm590_vm12 = vcmask 588800   ;;  %s1467_s15 = smul.u32 384, %s1924_s27  ;;  %s330_s11 = scalar_lea.vmem [#allocation15], %s1460_s8 }
  0xba   : > { %s1245_s10 = sshll.u32 %s330_s11, 4  ;;  %s1231_s8 = scalar_lea.sflag [#allocation6], %s2134_s17  ;;  %s2317_s10 = int_to_ptr.vmem [resolvable:$true] %s1245_s10 }
  0xbb   : > { %s2315_s19 = scalar_lea.hbm %s2366_s6, %s1467_s15  ;;  %p2395_p10 = scmp.ne.s32.totalorder %s2375_s26, 0 }
  0xbf   : > { %v375_v6 = vld [vmem:[#allocation2 + $0x8] sm:$0xf] }
  0xc0   : > { %v357_v7 = vld [vmem:[#allocation2 + $0x8] sm:$0xf]  ;;  %380 = vrot.lane.b32.xlu1 %v375_v6, %s1855_s28  ;;  %s1769_s28 = scalar_lea.vmem %s2317_s10, 384 }
  0xc1   : > { %362 = vrot.lane.b32.xlu0 %v357_v7, %s1856_s13  ;;  %v392_v8 = vld [vmem:[#allocation2 + $0x8] sm:$0xf]  ;;  %p1770_p7 = scmp.ne.s32.totalorder %s2317_s10, %s1769_s28 }
  0xc2   : > { %v352_v9 = vld [vmem:[#allocation2 + $0x8] sm:$0xf] }
  0xc3   : > { %355 = vst.msk [vmem:[#allocation3 + $0x8] sm:$0xf] %vm354_vm1, %v352_v9  ;;  %v409_v10 = vld [vmem:[#allocation2 + $0x8] sm:$0xf]  ;;  %p1771_p12 = pnand %p1770_p7, %p2395_p10 }
  0xc4   : > { %397 = vrot.lane.b32.xlu1 %v392_v8, %s1858_s16  ;;  %v426_v11 = vld [vmem:[#allocation2 + $0x8] sm:$0xf] }
  0xc5   : > { %395 = vrot.lane.b32.xlu0 %v2164_v3, %s1858_s16  ;;  %v443_v12 = vld [vmem:[#allocation2 + $0x8] sm:$0xf]  ;;  %p1772_p13 = pneg %p1771_p12 }
  0xc6   : > { %v460_v13 = vld [vmem:[#allocation2 + $0x8] sm:$0xf] }
  0xc7   : > { %v477_v14 = vld [vmem:[#allocation2 + $0x8] sm:$0xf] }
  0xc8   : > { %414 = vrot.lane.b32.xlu1 %v409_v10, %s1859_s25 }
  0xc9   : > { %412 = vrot.lane.b32.xlu0 %v2164_v3, %s1859_s25 }
  0xcc   : > { %431 = vrot.lane.b32.xlu1 %v426_v11, %s1860_s29 }
  0xcd   : > { %429 = vrot.lane.b32.xlu0 %v2164_v3, %s1860_s29 }
  0xd0   : > { %448 = vrot.lane.b32.xlu1 %v443_v12, %s1861_s7 }
  0xd1   : > { %446 = vrot.lane.b32.xlu0 %v2164_v3, %s1861_s7 }
  0xd4   : > { %465 = vrot.lane.b32.xlu1 %v460_v13, %s1862_s20 }
  0xd5   : > { %463 = vrot.lane.b32.xlu0 %v2164_v3, %s1862_s20 }
  0xd8   : > { %482 = vrot.lane.b32.xlu1 %v477_v14, %s1865_s30 }
  0xd9   : > { %480 = vrot.lane.b32.xlu0 %v2164_v3, %s1865_s30 }
  0xdd   : > { %515 = vperm.xlu0 %1577, %v512_v16  }
 0x129   : > { %v379_v17 = vpop.permute.xlu1 %378  ;;  %v361_v18 = vpop.permute.xlu0 %360 }
 0x12a   : > { %v382_v21 = vrot.slane %v379_v17, 4  ;;  %v364_v22 = vrot.slane %v361_v18, 4 }
 0x132   : > { %v381_v19 = vpop.permute.xlu1 %380 }
 0x133   : > { %v363_v20 = vpop.permute.xlu0 %362  ;;  %v383_v23 = vrot.slane %v381_v19, 4  ;;  %390 = vst.msk [vmem:[#allocation3 + $0x20] sm:$0xf] %vm354_vm1, %v381_v19 }
 0x134   : > { %v365_v24 = vrot.slane %v363_v20, 4  ;;  %373 = vst.msk [vmem:[#allocation3 + $0x14] sm:$0xf] %vm354_vm1, %v363_v20  ;;  %v493_v20 = vld [vmem:[#allocation7] sm:$0x3] }
 0x135   : > { %v384_v25 = vsel %vm366_vm3, %v382_v21, %v383_v23  ;;  %v691_v23 = vlaneseq }
 0x136   : > { %v367_v26 = vsel %vm366_vm3, %v364_v22, %v365_v24  ;;  %v386_v27 = vsel %vm385_vm4, %v379_v17, %v384_v25  ;;  %v398_v29 = vpop.permute.xlu1 %397 }
 0x137   : > { %v369_v28 = vsel %vm368_vm5, %v361_v18, %v367_v26  ;;  %v396_v30 = vpop.permute.xlu0 %395  ;;  %v400_v31 = vrot.slane %v398_v29, 4  ;;  %407 = vst.msk [vmem:[#allocation3 + $0x2c] sm:$0xf] %vm354_vm1, %v398_v29  ;;  %v692_v24 = vand.u32 127, %v691_v23 }
 0x138   : > { %v399_v32 = vrot.slane %v396_v30, 4  ;;  %v1381_v33 = vcombine.high %v2164_v3, %v369_v28  ;;  %v1380_v34 = vcombine.low %v2164_v3, %v369_v28 }
 0x139   : > { %v693_v25 = vadd.s32 128, %v692_v24  ;;  %v694_v26 = vadd.s32 256, %v692_v24 }
 0x13a   : > { %v401_v35 = vsel %vm366_vm3, %v399_v32, %v400_v31  ;;  %604 = vmatprep.subr.bf16.mxu0 %v1381_v33  ;;  %v415_v37 = vpop.permute.xlu1 %414 }
 0x13b   : > { %v403_v36 = vsel %vm402_vm6, %v396_v30, %v401_v35  ;;  %v413_v38 = vpop.permute.xlu0 %412  ;;  %v1578_v39 = vld [vmem:[#allocation3 + $0x8] ss:$12 sps:$4 sm:$0xff]   ;;  %605 = vmatpush1.bf16.msra.mxu0 %v1380_v34  ;;  %v417_v40 = vrot.slane %v415_v37, 4  ;;  %424 = vst.msk [vmem:[#allocation3 + $0x38] sm:$0xf] %vm354_vm1, %v415_v37 }
 0x13c   : > { %v416_v41 = vrot.slane %v413_v38, 4  ;;  %v1384_v42 = vcombine.high %v386_v27, %v403_v36  ;;  %v1383_v43 = vcombine.low %v386_v27, %v403_v36  ;;  %1430 = vmatpush3.bf16.msra.mxu1 %v1578_v39 }
 0x13d   : > { %1431 = vmatprep.subr.bf16.mxu1 %v1857_v5  ;;  %v2217_v27 = vmul.u32.u64.low 3817748708, %v692_v24  ;;  %v2218_v28 = vmul.u32.u64.high 3817748708, %v692_v24, %v2217_v27  ;;  %v2220_v29 = vmul.u32.u64.low 3817748708, %v693_v25  ;;  %v2221_v30 = vmul.u32.u64.high 3817748708, %v693_v25, %v2220_v29 }
 0x13e   : > { %v418_v44 = vsel %vm366_vm3, %v416_v41, %v417_v40  ;;  %606 = vmatprep.subr.bf16.mxu0 %v1384_v42  ;;  %v432_v46 = vpop.permute.xlu1 %431  ;;  %v1579_v48 = vld [vmem:[#allocation3 + $0x20] ss:$12 sps:$4 sm:$0xff]   ;;  %v2223_v31 = vmul.u32.u64.low 3817748708, %v694_v26  ;;  %v2224_v32 = vmul.u32.u64.high 3817748708, %v694_v26, %v2223_v31 }
 0x13f   : > { %v420_v45 = vsel %vm419_vm7, %v413_v38, %v418_v44  ;;  %v430_v47 = vpop.permute.xlu0 %429  ;;  %607 = vmatpush1.bf16.msra.mxu0 %v1383_v43  ;;  %v434_v49 = vrot.slane %v432_v46, 4  ;;  %441 = vst.msk [vmem:[#allocation3 + $0x44] sm:$0xf] %vm354_vm1, %v432_v46  ;;  %v701_v33 = vshrl.u32 %v2218_v28, 4  ;;  %v712_v34 = vshrl.u32 %v2221_v30, 4 }
 0x140   : > { %v433_v50 = vrot.slane %v430_v47, 4  ;;  %1432 = vmatpush3.bf16.msra.mxu1 %v1579_v48  ;;  %v723_v35 = vshrl.u32 %v2224_v32, 4  ;;  %v775_v31 = vld [vmem:[#allocation10] sm:$0x3]  ;;  %v1174_v46 = vrot.slane %v2158_v1, 4 }
 0x141   : > { %1433 = vmatprep.subr.bf16.mxu1 %v1857_v5  ;;  %v702_v36 = vmul.u32 18, %v701_v33  ;;  %v713_v37 = vmul.u32 18, %v712_v34 }
 0x142   : > { %v435_v51 = vsel %vm366_vm3, %v433_v50, %v434_v49  ;;  %v449_v53 = vpop.permute.xlu1 %448  ;;  %v724_v38 = vmul.u32 18, %v723_v35 }
 0x143   : > { %v437_v52 = vsel %vm436_vm8, %v430_v47, %v435_v51  ;;  %v447_v54 = vpop.permute.xlu0 %446  ;;  %v451_v55 = vrot.slane %v449_v53, 4  ;;  %458 = vst.msk [vmem:[#allocation3 + $0x50] sm:$0xf] %vm354_vm1, %v449_v53  ;;  %v703_v39 = vsub.s32 %v692_v24, %v702_v36  ;;  %v714_v40 = vsub.s32 %v693_v25, %v713_v37  ;;  %v855_v37 = vld [vmem:[#allocation12] sm:$0xf] }
 0x144   : > { %v450_v56 = vrot.slane %v447_v54, 4  ;;  %v1387_v57 = vcombine.high %v420_v45, %v437_v52  ;;  %v1386_v58 = vcombine.low %v420_v45, %v437_v52  ;;  %v725_v41 = vsub.s32 %v694_v26, %v724_v38 }
 0x145   : > { %vm728_vm13 = vcmp.ne.s32.totalorder %v703_v39, 0  ;;  %vm731_vm14 = vcmp.lt.s32.totalorder %v703_v39, 0  ;;  %vm729_vm15 = vcmp.ne.s32.totalorder %v714_v40, 0  ;;  %vm732_vm0 = vcmp.lt.s32.totalorder %v714_v40, 0 }
 0x146   : > { %v452_v59 = vsel %vm366_vm3, %v450_v56, %v451_v55  ;;  %608 = vmatprep.subr.bf16.mxu0 %v1387_v57  ;;  %v466_v61 = vpop.permute.xlu1 %465  ;;  %v1580_v63 = vld [vmem:[#allocation3 + $0x38] ss:$12 sps:$4 sm:$0xff]   ;;  %v737_v42 = vadd.s32 18, %v703_v39  ;;  %vm730_vm4 = vcmp.ne.s32.totalorder %v725_v41, 0  ;;  %vm733_vm5 = vcmp.lt.s32.totalorder %v725_v41, 0  ;;  %vm2229_vm6 = vmand %vm731_vm14, %vm728_vm13 }
 0x147   : > { %v454_v60 = vsel %vm453_vm9, %v447_v54, %v452_v59  ;;  %v464_v62 = vpop.permute.xlu0 %463  ;;  %609 = vmatpush1.bf16.msra.mxu0 %v1386_v58  ;;  %v468_v3 = vrot.slane %v466_v61, 4  ;;  %475 = vst.msk [vmem:[#allocation3 + $0x5c] sm:$0xf] %vm354_vm1, %v466_v61  ;;  %1434 = vmatpush3.bf16.msra.mxu1 %v1580_v63  ;;  %v738_v45 = vadd.s32 18, %v714_v40  ;;  %vm2233_vm8 = vmand %vm732_vm0, %vm729_vm15  ;;  %v739_v48 = vadd.s32 18, %v725_v41 }
 0x148   : > { %v467_v4 = vrot.slane %v464_v62, 4  ;;  %1435 = vmatprep.subr.bf16.mxu1 %v1857_v5  ;;  %vm2237_vm9 = vmand %vm733_vm5, %vm730_vm4  ;;  %v740_v52 = vsel %vm2229_vm6, %v737_v42, %v703_v39  ;;  %vm773_vm13 = vcmask 7168   ;;  %vm776_vm14 = vcmask 31744  }
 0x149   : > { %v741_v55 = vsel %vm2233_vm8, %v738_v45, %v714_v40  ;;  %vm860_vm15 = vcmask 1041408   ;;  %vm856_vm0 = vcmask 15360  }
 0x14a   : > { %v469_v6 = vsel %vm366_vm3, %v467_v4, %v468_v3  ;;  %v483_v8 = vpop.permute.xlu1 %482 }
 0x14b   : > { %v471_v7 = vsel %vm470_vm10, %v464_v62, %v469_v6  ;;  %v481_v9 = vpop.permute.xlu0 %480  ;;  %v485_v10 = vrot.slane %v483_v8, 4  ;;  %492 = vst.msk [vmem:[#allocation3 + $0x68] sm:$0xf] %vm354_vm1, %v483_v8  ;;  %v742_v62 = vsel %vm2237_vm9, %v739_v48, %v725_v41  ;;  %vm2247_vm10 = vcmp.lt.s32.totalorder %v740_v52, 16 }
 0x14c   : > { %v484_v11 = vrot.slane %v481_v9, 4  ;;  %v1390_v12 = vcombine.high %v454_v60, %v471_v7  ;;  %v1389_v13 = vcombine.low %v454_v60, %v471_v7 }
 0x14e   : > { %v486_v14 = vsel %vm366_vm3, %v484_v11, %v485_v10  ;;  %610 = vmatprep.subr.bf16.mxu0 %v1390_v12  ;;  %v1581_v16 = vld [vmem:[#allocation3 + $0x50] ss:$12 sps:$4 sm:$0xff]  }
 0x14f   : > { %v488_v15 = vsel %vm487_vm11, %v481_v9, %v486_v14  ;;  %611 = vmatpush1.bf16.msra.mxu0 %v1389_v13  ;;  %1436 = vmatpush3.bf16.msra.mxu1 %v1581_v16  ;;  %vm744_vm11 = vcmp.lt.s32.totalorder %v741_v55, 16 }
 0x150   : > { %v1393_v17 = vcombine.high %v488_v15, %v488_v15  ;;  %v1392_v18 = vcombine.low %v488_v15, %v488_v15  ;;  %1437 = vmatprep.subr.bf16.mxu1 %v1857_v5 }
 0x152   : > { %1395 = vmatprep.subr.msk.bf16.mxu0 %vm366_vm3, %v1393_v17  ;;  %v596_v19 = vsel %vm366_vm3, %v1392_v18, 0  ;;  %v1582_v21 = vld [vmem:[#allocation3 + $0x68] ss:$0 sps:$4 sm:$0xff]  }
 0x153   : > { %613 = vmatpush1.bf16.msra.mxu0 %v596_v19  ;;  %v602_v22 = vsel %vm366_vm3, %v1582_v21, 0 }
 0x154   : > { %1443 = vmatprep.subr.mxu0 %v1857_v5  ;;  %1438 = vmatpush3.bf16.msra.mxu1 %v602_v22 }
 0x155   : > { %1448 = vmatprep.subr.mxu1 %v1857_v5 }
 0x156   : > { %1396 = vmatmul.mubr.msk.bf16.vlgmr.msra.gmra.mrb[0].mxu0 %vm590_vm12, %v493_v20 }
 0x157   : > { %1445 = vmatprep.mubr.msk.f32.mxu0 %vm1864_vm2, %v1857_v5  ;;  %1440 = vmatmul.mubr.msk.bf16.vlgmr.msra.gmra.mrb[0].mxu1 %vm590_vm12, %v493_v20  ;;  %vm2255_vm12 = vcmp.lt.s32.totalorder %v742_v62, 16 }
 0x158   : > { %1450 = vmatprep.mubr.msk.f32.mxu1 %vm1864_vm2, %v1857_v5 }
 0x15c   : > { %v516_v43 = vpop.permute.xlu0 %515 }
 0x229   : > { %v638_v47 = vpop.f32.mrb[0].mxu0 }
 0x22a   : > { %v639_v49 = vadd.f32 %v638_v47, %v516_v43  ;;  %v640_v50 = vpop.f32.mrb[1].mxu0  ;;  %v679_v56 = vpop.f32.mrb[0].mxu1  ;;  %v1175_v47 = vrot.slane %v2160_v2, 4 }
 0x22b   : > { %v641_v53 = vadd.f32 %v640_v50, %v516_v43  ;;  %v642_v54 = vpop.f32.mrb[2].mxu0  ;;  %v680_v59 = vadd.f32 %v679_v56, %v516_v43  ;;  %v1441_v61 = vpop.f32.mrb[1].mxu1 }
 0x22c   : > { %v685_v57 = vmul.f32 0.2, %v639_v49  ;;  %v643_v58 = vpop.f32.mrb[3].mxu0  ;;  %v682_v4 = vpop.f32.mrb[2].mxu1 }
 0x22d   : > { %v686_v60 = vmul.f32 0.2, %v641_v53  ;;  %v687_v6 = vmul.f32 0.2, %v680_v59  ;;  %v1442_v8 = vpop.f32.mrb[3].mxu1 }
 0x22e   : > { %v2251_v3 = vmax.f32 %v639_v49, %v685_v57  ;;  %v1866_v4 = vmov 1966171168  }
 0x22f   : > { %v2253_v7 = vmax.f32 %v641_v53, %v686_v60  ;;  %v690_v12 = vmax.f32 %v680_v59, %v687_v6  ;;  %v1201_v6 = vunpack.c.l.s4 %v1866_v4 }
 0x230   : > { %v763_v10 = vsel %vm2247_vm10, %v2251_v3, -3.4028235e+38  ;;  %v752_v11 = vsel %vm2247_vm10, %v2251_v3, 0.0 }
 0x231   : > { %v764_v13 = vsel %vm744_vm11, %v2253_v7, -3.4028235e+38  ;;  %v766_v14 = vsel %vm366_vm3, %v763_v10, -inf  ;;  %v753_v15 = vsel %vm744_vm11, %v2253_v7, 0.0  ;;  %v755_v17 = vsel %vm366_vm3, %v752_v11, 0.0 }
 0x232   : > { %v767_v16 = vsel %vm366_vm3, %v764_v13, -inf  ;;  %v756_v18 = vsel %vm366_vm3, %v753_v15, 0.0  ;;  %v765_v19 = vsel %vm2255_vm12, %v690_v12, -3.4028235e+38  ;;  %v754_v21 = vsel %vm2255_vm12, %v690_v12, 0.0 }
 0x233   : > { %v769_v20 = vmax.f32 %v766_v14, %v767_v16  ;;  %v757_v22 = vadd.f32 %v756_v18, %v755_v17  ;;  %v768_v24 = vsel %vm354_vm1, %v765_v19, -inf  ;;  %v758_v25 = vsel %vm354_vm1, %v754_v21, 0.0 }
 0x234   : > { %v1202_v10 = vunpack.c.0.s8 %v1201_v6 }
 0x235   : > { %v770_v26 = vmax.f32 %v769_v20, %v768_v24  ;;  %v759_v27 = vadd.f32 %v758_v25, %v757_v22 }
 0x237   : > { %771 = vmax.xlane.f32.xlu0 %v770_v26  ;;  %760 = vadd.xlane.f32.xlu1 %v759_v27 }
 0x2c4   : > { %v761_v28 = vpop.xlane.xlu1 %760  ;;  %v772_v30 = vpop.xlane.xlu0 %771 }
 0x2c5   : > { %v762_v29 = vmul.f32 0.00390625, %v761_v28 }
 0x2c7   : > { %v774_v32 = vsel %vm773_vm13, %v762_v29, %v772_v30 }
 0x2c8   : > { %1444 = vmatpush3.msk.msra.mxu0 %vm366_vm3, %v774_v32 }
 0x2c9   : > { %1446 = vmatmul.mubr.msk.f32.vlgmr.msra.gmra.mrb[4].mxu0 %vm776_vm14, %v775_v31 }
 0x2ca   : > { %1030 = vmatprep.mubr.f32.mxu0 %v1857_v5 }
 0x39c   : > { %v849_v33 = vpop.f32.mrb[4].mxu0 }
 0x39d   : > { %v853_v34 = vmul.f32 0.2, %v849_v33  ;;  %v1447_v35 = vpop.f32.mrb[5].mxu0 }
 0x39f   : > { %v854_v36 = vmax.f32 %v849_v33, %v853_v34 }
 0x3a1   : > { %1449 = vmatpush3.msk.msra.mxu1 %vm860_vm15, %v854_v36 }
 0x3a2   : > { %1451 = vmatmul.mubr.msk.f32.vlgmr.msra.gmra.mrb[4].mxu1 %vm856_vm0, %v855_v37  ;;  %1453 = vmatprep.subr.mxu1 %v1857_v5 }
 0x3a3   : > { %1455 = vmatprep.mubr.msk.f32.mxu1 %vm1864_vm2, %v1857_v5  ;;  %v1173_v5 = vrot.slane %v2156_v0, 4  ;;  %vm1225_vm2 = vcmp.lt.s32.totalorder %v691_v23, 288 }
 0x475   : > { %v930_v38 = vpop.f32.mrb[4].mxu1 }
 0x476   : > { %935 = vrot.lane.b32.xlu1 %v930_v38, %s1856_s13  ;;  %v1452_v39 = vpop.f32.mrb[5].mxu1  ;;  %s1867_s13 = smov [#allocation15]  }
 0x477   : > { %s1773_s16 = sshll.u32 %s1867_s13, 4  ;;  %s1774_s16 = int_to_ptr.vmem [resolvable:$false] %s1773_s16 }
 0x478   : > { %p1776_p1 = scmp.lt.s32.totalorder %s2317_s10, %s1774_s16 }
 0x47a   : > { %1143 = vrot.lane.b32.xlu1 %v2156_v0, %s1859_s25  ;;  %v953_v0 = vld [vmem:[#allocation13] sm:$0x1] }
 0x47e   : > { %1145 = vrot.lane.b32.xlu1 %v2158_v1, %s1859_s25 }
 0x482   : > { %1176 = vrot.lane.b32.xlu1 %v1173_v5, %s1859_s25 }
 0x486   : > { %1180 = vrot.lane.b32.xlu1 %v1175_v47, %s1859_s25 }
 0x4e8   : > { %v936_v40 = vpop.permute.xlu1 %935 }
 0x4e9   : > { %v938_v41 = vadd.f32 %v936_v40, %v930_v38 }
 0x4eb   : > { %v1402_v42 = vmul.f32 -1.442695, %v938_v41 }
 0x4ec   : > { %v1144_v57 = vpop.permute.xlu1 %1143 }
 0x4ed   : > { %1583 = vpow2.f32 %v1402_v42 }
 0x4f7   : > { %v1584_v43 = vpop.eup %1583 }
 0x4f8   : > { %v942_v44 = vadd.f32 1.0, %v1584_v43 }
 0x4fa   : > { %1585 = vrcp.f32 %v942_v44 }
 0x504   : > { %v1586_v45 = vpop.eup %1585 }
 0x505   : > { %947 = vperm.xlu0 %1577, %v1586_v45  }
 0x509   : > { %1147 = vrot.lane.b32.xlu0 %v2160_v2, %s1859_s25 }
 0x50d   : > { %1178 = vrot.lane.b32.xlu0 %v1174_v46, %s1859_s25  ;;  %s1775_s25 = scalar_lea.vmem %s1774_s16, 768 }
 0x50e   : > { %p1777_p3 = scmp.lt.s32.totalorder %s1775_s25, %s1769_s28 }
 0x510   : > { %p1778_p2 = por %p1777_p3, %p1776_p1 }
 0x512   : > { %p1779_p0 = pnand %p1778_p2, %p1772_p13 }
 0x584   : > { %v948_v48 = vpop.permute.xlu0 %947 }
 0x585   : > { %v950_v49 = vmul.f32 %v948_v48, %v2251_v3  ;;  %v951_v50 = vmul.f32 %v948_v48, %v2253_v7  ;;  %v952_v51 = vmul.f32 %v948_v48, %v690_v12  ;;  %v1146_v3 = vpop.permute.xlu1 %1145  ;;  %v1129_v7 = vshrl.u32 %v691_v23, 7 }
 0x586   : > { %v1150_v24 = vsel %vm419_vm7, %v1144_v57, %v1146_v3 }
 0x587   : > { %1403 = vmatprep.subr.msk.mxu0 %vm366_vm3, %v951_v50  ;;  %1454 = vmatpush3.msk.msra.mxu1 %vm366_vm3, %v952_v51  ;;  %v1130_v11 = vsub.s32 0, %v1129_v7  ;;  %v1205_v14 = vsub.s32 %v1202_v10, %v1129_v7 }
 0x588   : > { %1404 = vmatpush1.msk.msra.mxu0 %vm366_vm3, %v950_v49  ;;  %1456 = vmatmul.mubr.msk.f32.vlgmr.msra.gmra.mrb[6].mxu1 %vm776_vm14, %v953_v0  ;;  %v1148_v9 = vpop.permute.xlu0 %1147 }
 0x589   : > { %1405 = vmatmul.mubr.msk.f32.vlgmr.msra.gmra.mrb[6].mxu0 %vm776_vm14, %v953_v0  ;;  %v1177_v8 = vpop.permute.xlu1 %1176  ;;  %v1151_v27 = vsel %vm419_vm7, %v1146_v3, %v1148_v9 }
 0x58c   : > { %v1179_v20 = vpop.permute.xlu0 %1178 }
 0x58d   : > { %v1181_v15 = vpop.permute.xlu1 %1180  ;;  %v1182_v31 = vsel %vm419_vm7, %v1177_v8, %v1179_v20 }
 0x58e   : > { %v1183_v30 = vsel %vm419_vm7, %v1179_v20, %v1181_v15 }
 0x65b   : > { %v1103_v1 = vpop.f32.mrb[6].mxu1 }
 0x65c   : > { %v1032_v2 = vpop.f32.mrb[6].mxu0  ;;  %v1410_v52 = vmul.f32 -1.442695, %v1103_v1  ;;  %v1457_v53 = vpop.f32.mrb[7].mxu1 }
 0x65d   : > { %v1408_v54 = vmul.f32 -1.442695, %v1032_v2  ;;  %v1034_v55 = vpop.f32.mrb[7].mxu0 }
 0x65e   : > { %v1409_v56 = vmul.f32 -1.442695, %v1034_v55  ;;  %1587 = vpow2.f32 %v1410_v52 }
 0x65f   : > { %1589 = vpow2.f32 %v1408_v54 }
 0x660   : > { %1591 = vpow2.f32 %v1409_v56 }
 0x668   : > { %v1588_v58 = vpop.eup %1587 }
 0x669   : > { %v1590_v59 = vpop.eup %1589  ;;  %v1118_v60 = vadd.f32 1.0, %v1588_v58 }
 0x66a   : > { %v1592_v61 = vpop.eup %1591  ;;  %v1116_v62 = vadd.f32 1.0, %v1590_v59 }
 0x66b   : > { %v1117_v63 = vadd.f32 1.0, %v1592_v61  ;;  %1593 = vrcp.f32 %v1118_v60 }
 0x66c   : > { %1595 = vrcp.f32 %v1116_v62 }
 0x66d   : > { %1597 = vrcp.f32 %v1117_v63 }
 0x675   : > { %v1594_v12 = vpop.eup %1593 }
 0x676   : > { %v1596_v13 = vpop.eup %1595  ;;  %v1160_v16 = vsub.f32 1.0, %v1594_v12  ;;  %v1139_v19 = vrot.slane %v1594_v12, %v1130_v11  ;;  %v1213_v34 = vrot.slane %v1594_v12, %v1205_v14 }
 0x677   : > { %v1598_v17 = vpop.eup %1597  ;;  %v1131_v18 = vrot.slane %v1596_v13, %v1130_v11  ;;  %v1158_v21 = vsub.f32 1.0, %v1596_v13 }
 0x678   : > { %v1199_v22 = vcombine.low %v1596_v13, %v1598_v17  ;;  %v1135_v25 = vrot.slane %v1598_v17, %v1130_v11  ;;  %v1159_v26 = vsub.f32 1.0, %v1598_v17  ;;  %v1172_v29 = vrot.slane %v1160_v16, %v1130_v11 }
 0x679   : > { %v1164_v28 = vrot.slane %v1158_v21, %v1130_v11  ;;  %v1155_v35 = vmul.f32 %v1150_v24, %v1131_v18  ;;  %v1157_v36 = vmul.f32 %v1148_v9, %v1139_v19 }
 0x67a   : > { %v1168_v32 = vrot.slane %v1159_v26, %v1130_v11  ;;  %v1206_v33 = vrot.slane %v1199_v22, %v1205_v14  ;;  %v1189_v38 = vmul.f32 %v1181_v15, %v1172_v29  ;;  %v1156_v39 = vmul.f32 %v1151_v27, %v1135_v25 }
 0x67b   : > { %v1187_v37 = vmul.f32 %v1182_v31, %v1164_v28 }
 0x67c   : > { %v1188_v40 = vmul.f32 %v1183_v30, %v1168_v32  ;;  %v1214_v41 = vcombine.low %v1206_v33, %v1213_v34  ;;  %v1192_v43 = vadd.f32 %v1189_v38, %v1157_v36 }
 0x67d   : > { %v1190_v42 = vadd.f32 %v1187_v37, %v1155_v35 }
 0x67e   : > { %v1191_v44 = vadd.f32 %v1188_v40, %v1156_v39  ;;  %v1221_v45 = vrot.slane %v1214_v41, %v1205_v14  ;;  %1195 = vst.msk [vmem:[%s330_s11 + $0x10] sm:$0xf] %vm354_vm1, %v1192_v43 }
 0x67f   : > { %1193 = vst [vmem:[%s330_s11] sm:$0xf] %v1190_v42 }
 0x680   : > { %1194 = vst [vmem:[%s330_s11 + $0x8] sm:$0xf] %v1191_v44  ;;  %1411 = vst.msk [vmem:[%s330_s11 + $0x4] ss:$8 sm:$0x7] %vm1225_vm2, %v1221_v45 }
 0x681   : > { %1782 = shalt.err (!%p1779_p0)
}
 0x682   : > { %s1783_s17 = scalar_lea.hbm %s2315_s19, 384  ;;  %s1787_s20 = scalar_lea.hbm %s2366_s6, 768 }
 0x683   : > { %p1784_p6 = scmp.ne.s32.totalorder %s2315_s19, %s1783_s17  ;;  %p1788_p8 = scmp.lt.u32.totalorder %s2315_s19, %s2366_s6 }
 0x684   : > { %p1789_p5 = scmp.lt.u32.totalorder %s1787_s20, %s1783_s17  ;;  %p1791_p7 = scmp.lt.u32.totalorder %s1783_s17, %s2315_s19 }
 0x685   : > { %p1785_p4 = pnand %p1784_p6, %p2395_p10 }
 0x686   : > { %p1790_p9 = por %p1789_p5, %p1788_p8 }
 0x687   : > { %p1786_p11 = pneg %p1785_p4 }
 0x688   : > { %p1792_p12 = por %p1791_p7, %p1790_p9 }
 0x68a   : > { %p1793_p13 = pnand %p1792_p12, %p1786_p11 }
 0x68c   : > { %1796 = shalt.err (!%p1793_p13)
}
 0x68d   : > { %1490 = dma.vmem_to_hbm [thread:$0]  (%p2395_p10), %s2317_s10, 384, %s2315_s19, %s1231_s8  }
 0x68e PF: > { %s1257_s11 = sand.u32 1, %s1835_s21   ;;  %p2396_p1 = scmp.ne.s32.totalorder %s2376_s14, 0 }
 0x68f   : > { %p2397_p3 = scmp.ge.s32.totalorder %s1847_s24, 2  ;;  %s1258_s18 = scalar_lea.sflag [#allocation6], %s1257_s11 }
 0x691   : > { %p1513_p2 = pnand %p2397_p3, %p2396_p1 }
 0x693   : > { %1830 = dma.done.wait (!%p1513_p2), %s1258_s18, 384  }
 0x694   : > { %1832 = vsyncadd (!%p1513_p2), %s1258_s18, 4294966912  ;;  %p22_p0 = scmp.ge.s32.totalorder %s2064_s9, 4   ;;  %s2398_s21 = smov %s1839_s22 }
 0x695   : > { %s2399_s22 = smov %s1843_s23  ;;  %s2400_s23 = smov %s2076_s12 }
 0x696   : > { %s2401_s24 = smov %s2064_s9  ;;  %24 = sbr.rel (!%p22_p0) target bundleno = 8 (0x8), region = 110 }
 0x69d   :  { %1263 = vsyncpa [#allocation5], 1 }
 0x69e   :  { %1265 = vsyncpa [#allocation5 + $0x1], 1 }
 0x69f   :  { %1266 = vsyncpa [#allocation8], 1 }
 0x6a0   :  { %1267 = vsyncpa [#allocation11], 1 }
 0x6a1   :  { %1268 = vsyncpa [#allocation14], 1 }
 0x6a2   :  { %1269 = vsyncpa [#allocation6], 1 }
 0x6a3   :  { %1271 = vsyncpa [#allocation6 + $0x1], 1 }

</bundles_post_ra>
